<compile_context>
chip_gen: v5e
topology: v5e:2x2
jax: 0.10.0
libtpu: 0.0.40
codegen_flags: <defaults>
</compile_context>

<pallas_src>
import math

import jax
import jax.numpy as jnp
from jax.experimental import pallas as pl
from jax.experimental.pallas import tpu as pltpu

_LANE = 128


def _tanh_gate_kernel(alpha_ref, beta_ref, x_ref, o_ref):
    # alpha_ref / beta_ref: (1, W) tiles (VMEM-resident, broadcast over rows).
    # x_ref / o_ref: (block_rows, W) tiles.
    x = x_ref[...].astype(jnp.float32)
    a = alpha_ref[...].astype(jnp.float32)
    b = beta_ref[...].astype(jnp.float32)
    o_ref[...] = (a * jnp.tanh(x) + b).astype(o_ref.dtype)


def _pick_fold(rows: int, size: int, max_width: int = 8192) -> int:
    """Largest k with rows % k == 0 and (k * size) % 128 == 0 (lane-dense)."""
    if size % _LANE == 0:
        return 1
    base = _LANE // math.gcd(size, _LANE)  # smallest k making k*size lane-aligned
    best = 1
    k = base
    while k * size <= max_width and k <= rows:
        if rows % k == 0:
            best = k
        k += base
    return best


def tanh_gate(x: jax.Array, alpha: jax.Array, beta: jax.Array,
              *, target_block_bytes: int = 4 << 20) -> jax.Array:
    """alpha * tanh(x) + beta with alpha/beta of shape (size,) == x.shape[-1]."""
    orig_shape = x.shape
    size = orig_shape[-1]
    assert alpha.shape == (size,) and beta.shape == (size,)

    x2 = x.reshape(-1, size)
    rows = x2.shape[0]

    # --- lane folding: make the last (lane) axis a large multiple of 128 ---
    fold = _pick_fold(rows, size)
    width = fold * size
    folded_rows = rows // fold
    if fold > 1:
        x2 = x2.reshape(folded_rows, width)
        alpha2 = jnp.tile(alpha, fold).reshape(1, width)
        beta2 = jnp.tile(beta, fold).reshape(1, width)
    else:
        alpha2 = alpha.reshape(1, width)
        beta2 = beta.reshape(1, width)

    # --- row-tile sizing: ~target_block_bytes per block, sublane-granular ---
    dt_bytes = jnp.dtype(x.dtype).itemsize
    gran = 8 if dt_bytes >= 4 else (16 if dt_bytes == 2 else 32)
    row_tile = max(gran, (target_block_bytes // (width * dt_bytes)) // gran * gran)
    if folded_rows <= row_tile:
        block_rows = folded_rows          # single block: full (possibly ragged) dim
    else:
        block_rows = int(row_tile)        # multiple of `gran`; last block may be ragged
    # NOTE: for extremely large D (>= ~256K f32) one would also tile the lane
    # axis with a 2-D grid; not needed at the shapes this module is used with.

    grid = (pl.cdiv(folded_rows, block_rows),)

    out = pl.pallas_call(
        _tanh_gate_kernel,
        out_shape=jax.ShapeDtypeStruct((folded_rows, width), x.dtype),
        grid_spec=pltpu.PrefetchScalarGridSpec(
            num_scalar_prefetch=0,
            grid=grid,
            in_specs=[
                pl.BlockSpec((1, width), lambda i: (0, 0)),            # alpha (resident)
                pl.BlockSpec((1, width), lambda i: (0, 0)),            # beta  (resident)
                pl.BlockSpec((block_rows, width), lambda i: (i, 0)),   # x
            ],
            out_specs=pl.BlockSpec((block_rows, width), lambda i: (i, 0)),
        ),
        compiler_params=pltpu.CompilerParams(
            dimension_semantics=("parallel",),
            vmem_limit_bytes=48 << 20,     # safe on v7x (64 MiB) and v5e/v6e (128 MiB)
        ),
    )(alpha2, beta2, x2)

    return out.reshape(orig_shape)


if __name__ == "__main__":
    key = jax.random.PRNGKey(0)
    batch, seq, hidden = 2, 8, 32

    x = jax.random.normal(key, (batch, seq, hidden), dtype=jnp.float32)

    # Deterministic parameter init matching nn.Parameter(torch.ones/zeros(size)).
    alpha = jnp.ones((hidden,), dtype=jnp.float32)
    beta = jnp.zeros((hidden,), dtype=jnp.float32)

    out = tanh_gate(x, alpha, beta)
    out = jax.block_until_ready(out)

    # Reference check in plain JAX.
    ref = alpha * jnp.tanh(x) + beta
    assert out.shape == x.shape
    assert jnp.allclose(out, ref, atol=1e-6, rtol=1e-6)

    print("KERNEL_OK")
</pallas_src>

<mosaic_0001>
module attributes {stable_mosaic.version = 11 : i64} {
  func.func @_tanh_gate_kernel(%arg0: i32, %arg1: memref<1x512xf32, #tpu.memory_space<vmem>>, %arg2: memref<1x512xf32, #tpu.memory_space<vmem>>, %arg3: memref<1x512xf32, #tpu.memory_space<vmem>>, %arg4: memref<1x512xf32, #tpu.memory_space<vmem>>) attributes {dimension_semantics = [#tpu.dimension_semantics<parallel>], iteration_bounds = array<i64: 1>, scalar_prefetch = 0 : i64, scratch_operands = 0 : i64, tpu.core_type = #tpu.core_type<tc>, window_params = [{pipeline_mode = #tpu.pipeline_mode<synchronous>, transform_indices = @transform_0, window_bounds = array<i64: 1, 512>}, {pipeline_mode = #tpu.pipeline_mode<synchronous>, transform_indices = @transform_1, window_bounds = array<i64: 1, 512>}, {transform_indices = @transform_2, window_bounds = array<i64: 1, 512>}, {transform_indices = @transform_3, window_bounds = array<i64: 1, 512>}]} {
    %c0 = arith.constant 0 : index
    %c0_0 = arith.constant 0 : index
    %0 = vector.load %arg3[%c0, %c0_0] : memref<1x512xf32, #tpu.memory_space<vmem>>, vector<1x512xf32>
    %c0_1 = arith.constant 0 : index
    %c0_2 = arith.constant 0 : index
    %1 = vector.load %arg1[%c0_1, %c0_2] : memref<1x512xf32, #tpu.memory_space<vmem>>, vector<1x512xf32>
    %c0_3 = arith.constant 0 : index
    %c0_4 = arith.constant 0 : index
    %2 = vector.load %arg2[%c0_3, %c0_4] : memref<1x512xf32, #tpu.memory_space<vmem>>, vector<1x512xf32>
    %3 = math.tanh %0 : vector<1x512xf32>
    %4 = arith.mulf %1, %3 : vector<1x512xf32>
    %5 = arith.addf %4, %2 : vector<1x512xf32>
    %c0_5 = arith.constant 0 : index
    %c0_6 = arith.constant 0 : index
    %6 = vector.load %arg4[%c0_5, %c0_6] : memref<1x512xf32, #tpu.memory_space<vmem>>, vector<1x512xf32>
    tpu.vector_store %arg4[%c0_5, %c0_6], %5 {strides = array<i32>} : memref<1x512xf32, #tpu.memory_space<vmem>>, vector<1x512xf32>,
    return
  }
  func.func @transform_0(%arg0: i32) -> (i32, i32) {
    %c0_i32 = arith.constant 0 : i32
    %c0_i32_0 = arith.constant 0 : i32
    %c0_i32_1 = arith.constant 0 : i32
    return %c0_i32, %c0_i32_0 : i32, i32
  }
  func.func @transform_1(%arg0: i32) -> (i32, i32) {
    %c0_i32 = arith.constant 0 : i32
    %c0_i32_0 = arith.constant 0 : i32
    %c0_i32_1 = arith.constant 0 : i32
    return %c0_i32, %c0_i32_0 : i32, i32
  }
  func.func @transform_2(%arg0: i32) -> (i32, i32) {
    %c0_i32 = arith.constant 0 : i32
    %c0_i32_0 = arith.constant 0 : i32
    return %arg0, %c0_i32 : i32, i32
  }
  func.func @transform_3(%arg0: i32) -> (i32, i32) {
    %c0_i32 = arith.constant 0 : i32
    %c0_i32_0 = arith.constant 0 : i32
    return %arg0, %c0_i32 : i32, i32
  }
}

</mosaic_0001>

<bundles_post_ra>
// kernel: tpu_custom_call.1
= control target key start
LH: loop header
LB: loop body
LE: loop exit
PB: predicated region body
PF: predicated region fallthrough
CT: control target
= control target key end

     0   :  { %8 = vsyncpa [#allocation3], 0  ;;  %s229_s0 = inlined_call_operand.hbm [shape: f32[1,512], index: 0, kind: input, shape index: {}]   ;;  %s230_s1 = inlined_call_operand.hbm [shape: f32[1,512], index: 1, kind: input, shape index: {}]   ;;  %s231_s2 = inlined_call_operand.hbm [shape: f32[1,512], index: 2, kind: input, shape index: {}]   ;;  %s232_s3 = inlined_call_operand.hbm [shape: f32[1,512], index: 3, kind: output, shape index: {}]  }
   0x1   :  { %9 = vsyncpa [#allocation6], 0  ;;  %s27_s14 = sshll.u32 %s230_s1, 4  ;;  %s28_s14 = int_to_ptr.hbm [resolvable:$true] %s27_s14 }
   0x2   :  { %10 = vsyncpa [#allocation4], 0  ;;  %s193_s15 = smov [#allocation5]   ;;  %s16_s19 = sshll.u32 %s229_s0, 4  ;;  %s17_s19 = int_to_ptr.hbm [resolvable:$true] %s16_s19 }
   0x3   :  { %s29_s16 = sshll.u32 %s193_s15, 4  ;;  %s194_s20 = smov [#allocation2]   ;;  %s30_s16 = int_to_ptr.vmem [resolvable:$true] %s29_s16 }
   0x4   :  { %32 = dma.hbm_to_vmem [thread:$0]  %s28_s14, 64, %s30_s16, [#allocation6]  }
   0x5   :  { %s18_s21 = sshll.u32 %s194_s20, 4  ;;  %s38_s24 = sshll.u32 %s231_s2, 4  ;;  %s19_s21 = int_to_ptr.vmem [resolvable:$true] %s18_s21  ;;  %s39_s24 = int_to_ptr.hbm [resolvable:$true] %s38_s24 }
   0x6   :  { %21 = dma.hbm_to_vmem [thread:$0]  %s17_s19, 64, %s19_s21, [#allocation3]  }
   0x7   :  { %s195_s1 = smov [#allocation7]  }
   0x8   :  { %s40_s25 = sshll.u32 %s195_s1, 4  ;;  %s41_s25 = int_to_ptr.vmem [resolvable:$true] %s40_s25 }
   0x9   :  { %43 = dma.hbm_to_vmem [thread:$0]  %s39_s24, 64, %s41_s25, [#allocation6]  }
   0xa   :  { %187 = dma.done.wait [#allocation3], 64  }
   0xb   :  { %188 = vsyncadd [#allocation3], 4294967232 }
   0xc   :  { %189 = dma.done.wait [#allocation6], 128  }
   0xd   :  { %190 = vsyncadd [#allocation6], 4294967168  ;;  %v56_v0 = vld [vmem:[#allocation7] sm:$0xf]  ;;  %v57_v1 = vld [vmem:[#allocation2] sm:$0xf]  ;;  %v62_v2 = vlaneseq }
   0xe   :  { %89 = vtanh.f32 %v56_v0  ;;  %v58_v4 = vld [vmem:[#allocation5] sm:$0xf]  ;;  %s196_s0 = smov [#allocation8]   ;;  %s74_s28 = sshll.u32 %s232_s3, 4  ;;  %s75_s28 = int_to_ptr.hbm [resolvable:$true] %s74_s28 }
   0xf   :  { %s72_s26 = sshll.u32 %s196_s0, 4  ;;  %vm64_vm0 = vcmp.lt.s32.totalorder %v62_v2, 512  ;;  %s73_s26 = int_to_ptr.vmem [resolvable:$true] %s72_s26 }
  0x14   :  { %v90_v3 = vpop.eup %89 }
  0x15   :  { %v60_v5 = vmul.f32 %v90_v3, %v57_v1 }
  0x17   :  { %v61_v6 = vadd.f32 %v60_v5, %v58_v4 }
  0x19   :  { %66 = vst.msk [vmem:[#allocation8] sm:$0xf] %vm64_vm0, %v61_v6 }
  0x1a   :  { %77 = dma.vmem_to_hbm [thread:$0]  %s73_s26, 64, %s75_s28, [#allocation4]  }
  0x1b   :  { %191 = dma.done.wait [#allocation4], 64  }
  0x1c   :  { %192 = vsyncadd [#allocation4], 4294967232 }
  0x1d   :  { %82 = vsyncpa [#allocation3], 1 }
  0x1e   :  { %83 = vsyncpa [#allocation6], 1 }
  0x1f   :  { %84 = vsyncpa [#allocation4], 1 }

</bundles_post_ra>
